<compile_context>
chip_gen: v6e
topology: v6e:2x2x1
jax: 0.10.0
libtpu: 0.0.40
codegen_flags: <defaults>
</compile_context>

<pallas_src>
import functools

import jax
import jax.numpy as jnp
from jax import lax
from jax.experimental import pallas as pl
from jax.experimental.pallas import tpu as pltpu


def _ia3_linear_kernel(x_ref, w_ref, b_ref, s_ref, o_ref, acc_ref, *, is_feedforward):
    # x_ref:  (tm, tk)        activation tile (native dtype)
    # w_ref:  (tn, tk)        weight tile, untransposed (out, in) layout
    # b_ref:  (1, tn)  f32    bias
    # s_ref:  (1, tk) x.dtype s_in   (feedforward)      OR
    #         (1, tn)  f32    s_out  (non-feedforward)
    # o_ref:  (tm, tn)        output tile
    # acc_ref:(tm, tn) f32    VMEM accumulator, resident across the innermost K axis
    k = pl.program_id(2)

    @pl.when(k == 0)
    def _():
        acc_ref[...] = jnp.zeros_like(acc_ref)

    x = x_ref[...]
    if is_feedforward:
        # Native-dtype multiply (v6e/v7x VPU has bf16; Mosaic widens on v5e anyway).
        x = x * s_ref[...]

    # (tm, tk) x (tn, tk) contracted over tk -> (tm, tn); no weight transpose in HBM.
    acc_ref[...] += lax.dot_general(
        x, w_ref[...],
        dimension_numbers=(((1,), (1,)), ((), ())),
        preferred_element_type=jnp.float32)

    @pl.when(k == pl.num_programs(2) - 1)
    def _():
        y = acc_ref[...] + b_ref[...]
        if not is_feedforward:
            y = y * s_ref[...]
        o_ref[...] = y.astype(o_ref.dtype)


def _pick_tile(dim, target, align, floor):
    """Choose (tile, padded_dim): tile <= target, multiple of `align`, >= `floor`.

    If `dim` fits in one tile, use the full extent (always legal for BlockSpec).
    Otherwise pick the candidate tile that minimizes zero-padding of `dim`
    (exact divisors win; larger tile wins ties). Never degrade below `floor` —
    prefer padding over degenerate, overhead-dominated tiles."""
    if dim <= target:
        return dim, dim
    floor = max(floor, align)
    best_t = max((target // align) * align, align)
    best_pad = ((dim + best_t - 1) // best_t) * best_t
    t = best_t - align
    while t >= floor and best_pad != dim:
        padded = ((dim + t - 1) // t) * t
        if padded < best_pad:
            best_t, best_pad = t, padded
        t -= align
    return best_t, best_pad


def _tile_targets():
    """Per-generation tile targets (arithmetic-intensity / step-overhead driven)."""
    kind = ""
    try:
        kind = jax.devices()[0].device_kind.lower()
    except Exception:
        pass
    if "v6" in kind:          # machine balance ~680 rows per bf16 weight byte
        tm_t, tn_t, tk_t = 1024, 512, 512
    elif "v7" in kind:        # ~310 rows; also amortize 0.35us/step with bigger K tile
        tm_t, tn_t, tk_t = 512, 512, 1024
    else:                     # v5e / unknown: ~240 rows suffices
        tm_t, tn_t, tk_t = 256, 512, 512
    return tm_t, tn_t, tk_t


@functools.partial(jax.jit, static_argnames=("is_feedforward",))
def ia3_linear_forward(x, weight, bias, ia3_l, *, is_feedforward):
    """x: [..., in_features]; weight: [out_features, in_features]; bias: [out_features]
    or None; ia3_l: (1, in_features) if is_feedforward else (out_features, 1)."""
    out_features, in_features = weight.shape
    lead = x.shape[:-1]
    out_dtype = x.dtype

    x2 = x.reshape(-1, in_features)
    M = x2.shape[0]

    if bias is None:
        bias = jnp.zeros((out_features,), jnp.float32)
    ia3_flat = ia3_l.reshape(-1)                               # .flatten() semantics

    # ---- tile selection -------------------------------------------------------
    tm_t, tn_t, tk_t = _tile_targets()
    m_align = max(8, 32 // jnp.dtype(x2.dtype).itemsize)       # 8 f32 / 16 bf16 / 32 int8
    tm, Mp = _pick_tile(M, tm_t, m_align, 128)
    tn, Np = _pick_tile(out_features, tn_t, 128, 256)
    tk, Kp = _pick_tile(in_features, tk_t, 128, 256)

    # Megacore: if M collapsed into a single tile, split N into >=2 parallel tiles
    # so the second TensorCore (v7x) has work on small-batch / decode shapes.
    if (Mp // tm) == 1 and (Np // tn) == 1 and out_features >= 512:
        half = (((out_features + 1) // 2) + 127) // 128 * 128
        tn, Np = _pick_tile(out_features, max(half, 256), 128, 256)

    # ---- operand prep (zero-padding is benign; padded rows/cols sliced off) ---
    if Mp != M or Kp != in_features:
        x2 = jnp.pad(x2, ((0, Mp - M), (0, Kp - in_features)))
    w = weight
    if Np != out_features or Kp != in_features:
        w = jnp.pad(w, ((0, Np - out_features), (0, Kp - in_features)))
    b2 = bias.astype(jnp.float32).reshape(1, out_features)
    if Np != out_features:
        b2 = jnp.pad(b2, ((0, 0), (0, Np - out_features)))

    if is_feedforward:
        s = ia3_flat.astype(x2.dtype).reshape(1, in_features)
        if Kp != in_features:
            s = jnp.pad(s, ((0, 0), (0, Kp - in_features)))
        s_spec = pl.BlockSpec((1, tk), lambda i, j, k: (0, k))
        s_bytes = tk * jnp.dtype(x2.dtype).itemsize
    else:
        s = ia3_flat.astype(jnp.float32).reshape(1, out_features)
        if Np != out_features:
            s = jnp.pad(s, ((0, 0), (0, Np - out_features)))
        s_spec = pl.BlockSpec((1, tn), lambda i, j, k: (0, j))
        s_bytes = tn * 4

    grid = (Mp // tm, Np // tn, Kp // tk)

    kernel = functools.partial(_ia3_linear_kernel, is_feedforward=is_feedforward)

    # ---- VMEM budget: real estimate + headroom, capped well below physical ----
    xb = jnp.dtype(x2.dtype).itemsize
    wb = jnp.dtype(w.dtype).itemsize
    ob = jnp.dtype(out_dtype).itemsize
    vmem_est = (2 * (tm * tk * xb + tn * tk * wb + tm * tn * ob + 4 * tn + s_bytes)
                + tm * tn * 4)
    vmem_limit = int(min(max(2 * vmem_est, 32 << 20), 48 << 20))

    # Advisory cost: W is streamed once per M-tile, x once per N-tile.
    cost = pl.CostEstimate(
        flops=2 * M * in_features * out_features,
        transcendentals=0,
        bytes_accessed=int(grid[1] * Mp * Kp * xb
                           + grid[0] * Np * Kp * wb
                           + Mp * Np * ob
                           + Np * 4 + s_bytes))

    y = pl.pallas_call(
        kernel,
        out_shape=jax.ShapeDtypeStruct((Mp, Np), out_dtype),
        grid_spec=pltpu.PrefetchScalarGridSpec(
            num_scalar_prefetch=0,
            grid=grid,
            in_specs=[
                pl.BlockSpec((tm, tk), lambda i, j, k: (i, k)),   # x tile
                pl.BlockSpec((tn, tk), lambda i, j, k: (j, k)),   # W tile (out, in)
                pl.BlockSpec((1, tn), lambda i, j, k: (0, j)),    # bias
                s_spec,                                           # s_in OR s_out
            ],
            out_specs=pl.BlockSpec((tm, tn), lambda i, j, k: (i, j)),
            scratch_shapes=[pltpu.VMEM((tm, tn), jnp.float32)],
        ),
        compiler_params=pltpu.CompilerParams(
            dimension_semantics=("parallel", "parallel", "arbitrary"),
            vmem_limit_bytes=vmem_limit),
        cost_estimate=cost,
    )(x2, w, b2, s)

    y = y[:M, :out_features]
    return y.reshape(*lead, out_features)


def _reference(x, weight, bias, ia3_l, is_feedforward):
    s = ia3_l.reshape(-1)
    if is_feedforward:
        return (x * s) @ weight.T + bias
    return (x @ weight.T + bias) * s


if __name__ == "__main__":
    key = jax.random.PRNGKey(0)
    B, S, in_features, out_features = 2, 8, 32, 32

    k_x, k_w, k_b, k_s1, k_s2 = jax.random.split(key, 5)
    x = jax.random.normal(k_x, (B, S, in_features), jnp.float32)
    weight = jax.random.normal(k_w, (out_features, in_features), jnp.float32) * 0.1
    bias = jax.random.normal(k_b, (out_features,), jnp.float32) * 0.1

    # Deterministic IA3 parameters. (Module default init is constant 1.0, i.e. identity
    # scaling; use non-trivial values to exercise both paths.)
    ia3_ff = jax.random.normal(k_s1, (1, in_features), jnp.float32)      # feedforward
    ia3_out = jax.random.normal(k_s2, (out_features, 1), jnp.float32)    # non-feedforward

    ok = True
    for is_ff, ia3 in ((True, ia3_ff), (False, ia3_out)):
        y = jax.block_until_ready(
            ia3_linear_forward(x, weight, bias, ia3, is_feedforward=is_ff))
        y_ref = _reference(x, weight, bias, ia3, is_ff)
        ok = ok and (y.shape == y_ref.shape) and (y.dtype == x.dtype)
        ok = ok and bool(jnp.allclose(y, y_ref, atol=1e-4, rtol=1e-4))

    print("KERNEL_OK" if ok else "KERNEL_MISMATCH")
</pallas_src>

<mosaic_0001>
module attributes {stable_mosaic.version = 11 : i64} {
  func.func @_ia3_linear_kernel(%arg0: i32, %arg1: i32, %arg2: i32, %arg3: memref<16x32xf32, #tpu.memory_space<vmem>>, %arg4: memref<32x32xf32, #tpu.memory_space<vmem>>, %arg5: memref<1x32xf32, #tpu.memory_space<vmem>>, %arg6: memref<1x32xf32, #tpu.memory_space<vmem>>, %arg7: memref<16x32xf32, #tpu.memory_space<vmem>>, %arg8: memref<16x32xf32, #tpu.memory_space<vmem>>) attributes {dimension_semantics = [#tpu.dimension_semantics<parallel>, #tpu.dimension_semantics<parallel>, #tpu.dimension_semantics<arbitrary>], iteration_bounds = array<i64: 1, 1, 1>, scalar_prefetch = 0 : i64, scratch_operands = 1 : i64, tpu.core_type = #tpu.core_type<tc>, window_params = [{transform_indices = @transform_0, window_bounds = array<i64: 16, 32>}, {transform_indices = @transform_1, window_bounds = array<i64: 32, 32>}, {transform_indices = @transform_2, window_bounds = array<i64: 1, 32>}, {transform_indices = @transform_3, window_bounds = array<i64: 1, 32>}, {transform_indices = @transform_4, window_bounds = array<i64: 16, 32>}]} {
    %c0_i32 = arith.constant 0 : i32
    %0 = arith.cmpi eq, %arg2, %c0_i32 : i32
    %1 = arith.extui %0 : i1 to i32
    %c0_i32_0 = arith.constant 0 : i32
    %2 = arith.cmpi ne, %1, %c0_i32_0 : i32
    scf.if %2 {
      %cst_12 = arith.constant 0.000000e+00 : f32
      %15 = vector.broadcast %cst_12 : f32 to vector<16x32xf32>
      %c0_13 = arith.constant 0 : index
      %c0_14 = arith.constant 0 : index
      %16 = vector.load %arg8[%c0_13, %c0_14] : memref<16x32xf32, #tpu.memory_space<vmem>>, vector<16x32xf32>
      tpu.vector_store %arg8[%c0_13, %c0_14], %15 {strides = array<i32>} : memref<16x32xf32, #tpu.memory_space<vmem>>, vector<16x32xf32>,
    } else {
    }
    %c0 = arith.constant 0 : index
    %c0_1 = arith.constant 0 : index
    %3 = vector.load %arg3[%c0, %c0_1] : memref<16x32xf32, #tpu.memory_space<vmem>>, vector<16x32xf32>
    %c0_2 = arith.constant 0 : index
    %c0_3 = arith.constant 0 : index
    %4 = vector.load %arg6[%c0_2, %c0_3] : memref<1x32xf32, #tpu.memory_space<vmem>>, vector<1x32xf32>
    %5 = vector.broadcast %4 : vector<1x32xf32> to vector<16x32xf32>
    %6 = arith.mulf %3, %5 : vector<16x32xf32>
    %c0_4 = arith.constant 0 : index
    %c0_5 = arith.constant 0 : index
    %7 = vector.load %arg8[%c0_4, %c0_5] : memref<16x32xf32, #tpu.memory_space<vmem>>, vector<16x32xf32>
    %c0_6 = arith.constant 0 : index
    %c0_7 = arith.constant 0 : index
    %8 = vector.load %arg4[%c0_6, %c0_7] : memref<32x32xf32, #tpu.memory_space<vmem>>, vector<32x32xf32>
    %cst = arith.constant dense<0.000000e+00> : vector<16x32xf32>
    %9 = tpu.matmul %6, %8, %cst {dimension_numbers = #tpu.dot_dimension_numbers<[1], [1], [0], [0], [0, 0, 1, 0], [], []>} : vector<16x32xf32>, vector<32x32xf32>, vector<16x32xf32> -> vector<16x32xf32>
    %10 = arith.addf %7, %9 : vector<16x32xf32>
    %c0_8 = arith.constant 0 : index
    %c0_9 = arith.constant 0 : index
    %11 = vector.load %arg8[%c0_8, %c0_9] : memref<16x32xf32, #tpu.memory_space<vmem>>, vector<16x32xf32>
    tpu.vector_store %arg8[%c0_8, %c0_9], %10 {strides = array<i32>} : memref<16x32xf32, #tpu.memory_space<vmem>>, vector<16x32xf32>,
    %c0_i32_10 = arith.constant 0 : i32
    %12 = arith.cmpi eq, %arg2, %c0_i32_10 : i32
    %13 = arith.extui %12 : i1 to i32
    %c0_i32_11 = arith.constant 0 : i32
    %14 = arith.cmpi ne, %13, %c0_i32_11 : i32
    scf.if %14 {
      %c0_12 = arith.constant 0 : index
      %c0_13 = arith.constant 0 : index
      %15 = vector.load %arg8[%c0_12, %c0_13] : memref<16x32xf32, #tpu.memory_space<vmem>>, vector<16x32xf32>
      %c0_14 = arith.constant 0 : index
      %c0_15 = arith.constant 0 : index
      %16 = vector.load %arg5[%c0_14, %c0_15] : memref<1x32xf32, #tpu.memory_space<vmem>>, vector<1x32xf32>
      %17 = vector.broadcast %16 : vector<1x32xf32> to vector<16x32xf32>
      %18 = arith.addf %15, %17 : vector<16x32xf32>
      %c0_16 = arith.constant 0 : index
      %c0_17 = arith.constant 0 : index
      %19 = vector.load %arg7[%c0_16, %c0_17] : memref<16x32xf32, #tpu.memory_space<vmem>>, vector<16x32xf32>
      tpu.vector_store %arg7[%c0_16, %c0_17], %18 {strides = array<i32>} : memref<16x32xf32, #tpu.memory_space<vmem>>, vector<16x32xf32>,
    } else {
    }
    return
  }
  func.func @transform_0(%arg0: i32, %arg1: i32, %arg2: i32) -> (i32, i32) {
    %c0_i32 = arith.constant 0 : i32
    return %arg0, %arg2 : i32, i32
  }
  func.func @transform_1(%arg0: i32, %arg1: i32, %arg2: i32) -> (i32, i32) {
    %c0_i32 = arith.constant 0 : i32
    return %arg1, %arg2 : i32, i32
  }
  func.func @transform_2(%arg0: i32, %arg1: i32, %arg2: i32) -> (i32, i32) {
    %c0_i32 = arith.constant 0 : i32
    %c0_i32_0 = arith.constant 0 : i32
    return %c0_i32, %arg1 : i32, i32
  }
  func.func @transform_3(%arg0: i32, %arg1: i32, %arg2: i32) -> (i32, i32) {
    %c0_i32 = arith.constant 0 : i32
    %c0_i32_0 = arith.constant 0 : i32
    return %c0_i32, %arg2 : i32, i32
  }
  func.func @transform_4(%arg0: i32, %arg1: i32, %arg2: i32) -> (i32, i32) {
    %c0_i32 = arith.constant 0 : i32
    return %arg0, %arg1 : i32, i32
  }
}

</mosaic_0001>

<bundles_post_ra>
// kernel: ia3_linear_forward.1
= control target key start
LH: loop header
LB: loop body
LE: loop exit
PB: predicated region body
PF: predicated region fallthrough
CT: control target
= control target key end

     0   :  { %9 = vsyncpa [#allocation4], 0  ;;  %s370_s0 = inlined_call_operand.hbm [shape: f32[16,32], index: 0, kind: input, shape index: {}]   ;;  %s371_s1 = inlined_call_operand.hbm [shape: f32[32,32], index: 1, kind: input, shape index: {}]   ;;  %s372_s2 = inlined_call_operand.vmem [shape: f32[1,32], index: 2, kind: input, shape index: {}]   ;;  %s373_s3 = inlined_call_operand.vmem [shape: f32[1,32], index: 3, kind: input, shape index: {}]   ;;  %s374_s4 = inlined_call_operand.hbm [shape: f32[16,32], index: 4, kind: output, shape index: {}]  }
   0x1   :  { %10 = vsyncpa [#allocation7], 0 }
   0x2   :  { %11 = vsyncpa [#allocation5], 0  ;;  %s299_s15 = smov [#allocation3]  }
   0x3   :  { %s17_s16 = sshll.u32 %s299_s15, 4  ;;  %s18_s16 = int_to_ptr.vmem [resolvable:$true] %s17_s16 }
   0x4   :  { %s241_s17 = scalar_lea.vmem %s18_s16, 256  ;;  %p246_p1 = scmp.lt.s32.totalorder %s18_s16, %s18_s16 }
   0x5   :  { %p242_p0 = scmp.ne.s32.totalorder %s18_s16, %s241_s17  ;;  %p247_p2 = scmp.lt.s32.totalorder %s241_s17, %s241_s17 }
   0x7   :  { %p248_p3 = por %p247_p2, %p246_p1 }
   0x9   :  { %p249_p4 = pnand %p248_p3, %p242_p0 }
   0xb   :  { %252 = shalt.err (!%p249_p4)
}
   0xc   :  { %s300_s18 = smov 128   ;;  %s301_s19 = smov 8  }
   0xd   :  { %23 = dma.hbm_to_vmem [thread:$0]  %s370_s0, 256, %s18_s16, [#allocation4], %s300_s18, %s300_s18, %s301_s19  }
   0xe   :  { %s302_s22 = smov [#allocation6]  }
   0xf   :  { %s29_s23 = sshll.u32 %s302_s22, 4  ;;  %s30_s23 = int_to_ptr.vmem [resolvable:$true] %s29_s23 }
  0x10   :  { %s261_s24 = scalar_lea.vmem %s30_s23, 512  ;;  %p266_p6 = scmp.lt.s32.totalorder %s30_s23, %s30_s23 }
  0x11   :  { %p262_p5 = scmp.ne.s32.totalorder %s30_s23, %s261_s24  ;;  %p267_p7 = scmp.lt.s32.totalorder %s261_s24, %s261_s24 }
  0x13   :  { %p268_p8 = por %p267_p7, %p266_p6 }
  0x15   :  { %p269_p9 = pnand %p268_p8, %p262_p5 }
  0x17   :  { %272 = shalt.err (!%p269_p9)
}
  0x18   :  { %35 = dma.hbm_to_vmem [thread:$0]  %s371_s1, 512, %s30_s23, [#allocation7], %s300_s18, %s300_s18, %s301_s19  }
  0x19   :  { %293 = dma.done.wait [#allocation4], 256  }
  0x1a   :  { %294 = vsyncadd [#allocation4], 4294967040 }
  0x1b   :  { %295 = dma.done.wait [#allocation7], 512  }
  0x1c   :  { %296 = vsyncadd [#allocation7], 4294966784  ;;  %vm50_vm0 = vcmask 261120   ;;  %v303_v0 = vmov 0.0   ;;  %v69_v1 = vld [vmem:[#allocation6 + $0x18] sm:$0xff]  ;;  %v68_v2 = vld [vmem:[#allocation6 + $0x10] sm:$0xff] }
  0x1d   :  { %52 = vst.msk [vmem:[#allocation2 + $0x8] sm:$0xff] %vm50_vm0, %v303_v0  ;;  %51 = vst.msk [vmem:[#allocation2] sm:$0xff] %vm50_vm0, %v303_v0  ;;  %216 = vmatprep.subr.msk.mxu0 %vm50_vm0, %v69_v1  ;;  %v53_v3 = vld [vmem:[#allocation3] sm:$0xff]  ;;  %v202_v4 = vld [vmem:[%s373_s3] ss:$0 sm:$0xff]  ;;  %s304_s28 = smov [#allocation8]  }
  0x1e   :  { %217 = vmatpush3.xpose.msk.msra.mxu0 %vm50_vm0, %v69_v1  ;;  %v62_v5 = vmul.f32 %v202_v4, %v53_v3  ;;  %v67_v6 = vld [vmem:[#allocation6 + $0x8] sm:$0xff]  ;;  %v66_v7 = vld [vmem:[#allocation6] sm:$0xff]  ;;  %v54_v8 = vld [vmem:[#allocation3 + $0x8] sm:$0xff]  ;;  %s189_s29 = sshll.u32 %s304_s28, 4  ;;  %s190_s29 = int_to_ptr.vmem [resolvable:$true] %s189_s29 }
  0x1f   :  { %218 = vmatprep.subr.msk.mxu0 %vm50_vm0, %v68_v2  ;;  %v63_v9 = vmul.f32 %v202_v4, %v54_v8  ;;  %v209_v16 = vld [vmem:[%s372_s2] ss:$0 sm:$0xff]  ;;  %s273_s30 = scalar_lea.vmem %s190_s29, 256  ;;  %p278_p11 = scmp.lt.s32.totalorder %s190_s29, %s190_s29 }
  0x20   :  { %224 = vmatprep.mubr.msk.f32.mxu0 %vm50_vm0, %v62_v5  ;;  %p274_p10 = scmp.ne.s32.totalorder %s190_s29, %s273_s30  ;;  %p279_p12 = scmp.lt.s32.totalorder %s273_s30, %s273_s30 }
  0x22   :  { %219 = vmatpush3.xpose.msk.msra.mxu0 %vm50_vm0, %v68_v2  ;;  %p280_p13 = por %p279_p12, %p278_p11 }
  0x23   :  { %220 = vmatprep.subr.msk.mxu0 %vm50_vm0, %v67_v6 }
  0x24   :  { %v65_v10 = vld [vmem:[#allocation2 + $0x8] sm:$0xff]  ;;  %v64_v12 = vld [vmem:[#allocation2] sm:$0xff]  ;;  %p281_p0 = pnand %p280_p13, %p274_p10 }
  0x26   :  { %221 = vmatpush3.xpose.msk.msra.mxu0 %vm50_vm0, %v67_v6 }
  0x27   :  { %222 = vmatprep.subr.msk.mxu0 %vm50_vm0, %v66_v7 }
  0x2a   :  { %223 = vmatpush3.xpose.msk.msra.mxu0 %vm50_vm0, %v66_v7 }
  0x2d   :  { %225 = vmatmul.mubr.msk.f32.vlgmr.msra.gmra.mxu0 %vm50_vm0, %v63_v9 }
  0xed   :  { %v226_v11 = vpop.f32.mrf.mxu0 }
  0xee   :  { %v165_v13 = vadd.f32 %v226_v11, %v65_v10 }
  0xef   :  { %v155_v14 = vpop.f32.mrf.mxu0 }
  0xf0   :  { %167 = vst.msk [vmem:[#allocation2 + $0x8] sm:$0xff] %vm50_vm0, %v165_v13  ;;  %v164_v15 = vadd.f32 %v155_v14, %v64_v12 }
  0xf2   :  { %166 = vst.msk [vmem:[#allocation2] sm:$0xff] %vm50_vm0, %v164_v15 }
  0xf7   :  { %v172_v17 = vld [vmem:[#allocation2 + $0x8] sm:$0xff] }
  0xf8   :  { %v181_v18 = vadd.f32 %v209_v16, %v172_v17 }
  0xf9   :  { %v171_v19 = vld [vmem:[#allocation2] sm:$0xff] }
  0xfa   :  { %v180_v20 = vadd.f32 %v209_v16, %v171_v19  ;;  %183 = vst.msk [vmem:[#allocation8 + $0x8] sm:$0xff] %vm50_vm0, %v181_v18 }
  0xfc   :  { %182 = vst.msk [vmem:[#allocation8] sm:$0xff] %vm50_vm0, %v180_v20 }
  0xfd   :  { %284 = shalt.err (!%p281_p0)
}
  0xfe   :  { %195 = dma.vmem_to_hbm [thread:$0]  %s190_s29, 256, %s374_s4, [#allocation5], %s300_s18, %s300_s18, %s301_s19  }
  0xff   :  { %297 = dma.done.wait [#allocation5], 256  }
 0x100   :  { %298 = vsyncadd [#allocation5], 4294967040 }
 0x101   :  { %199 = vsyncpa [#allocation4], 1 }
 0x102   :  { %200 = vsyncpa [#allocation7], 1 }
 0x103   :  { %201 = vsyncpa [#allocation5], 1 }

</bundles_post_ra>
